<compile_context>
chip_gen: v6e
topology: v6e:2x2x1
jax: 0.10.0
libtpu: 0.0.40
codegen_flags: <defaults>
</compile_context>

<pallas_src>
import functools
import math

import jax
import jax.numpy as jnp
from jax import lax
from jax.experimental import pallas as pl
from jax.experimental.pallas import tpu as pltpu

LOG_STD_MIN = -20.0
LOG_STD_MAX = 2.0
HIDDEN = 256
LANE = 128
_HALF_LOG_2PI = 0.5 * math.log(2.0 * math.pi)
_LOG_2 = math.log(2.0)


def _round_up(x: int, m: int) -> int:
    return (x + m - 1) // m * m


# ----------------------------------------------------------------------------
# Kernel
# ----------------------------------------------------------------------------
def _policy_kernel(obs_ref, *rest, deterministic: bool, max_action: float,
                   action_dim: int):
    if deterministic:
        (w1_ref, b1_ref, w2_ref, b2_ref, w3_ref, b3_ref,
         w4_ref, b4_ref, out_ref) = rest
        eps_ref = None
        eps_pad = None
    else:
        (eps_ref, w1_ref, b1_ref, w2_ref, b2_ref, w3_ref, b3_ref,
         w4_ref, b4_ref, out_ref, eps_pad) = rest

    # Trunk: bf16 matmuls on the MXU, f32 accumulation, f32 elementwise tail.
    x = obs_ref[...].astype(jnp.bfloat16)
    h = jnp.maximum(
        jnp.dot(x, w1_ref[...], preferred_element_type=jnp.float32)
        + b1_ref[...], 0.0)
    h = jnp.maximum(
        jnp.dot(h.astype(jnp.bfloat16), w2_ref[...],
                preferred_element_type=jnp.float32) + b2_ref[...], 0.0)
    h = jnp.maximum(
        jnp.dot(h.astype(jnp.bfloat16), w3_ref[...],
                preferred_element_type=jnp.float32) + b3_ref[...], 0.0)

    # Single fused lane-dense head matmul.  Columns [0,128) -> mean (zero past
    # A); columns [128,256) -> log_std with multiplier/offset already folded in.
    y = jnp.dot(h.astype(jnp.bfloat16), w4_ref[...],
                preferred_element_type=jnp.float32) + b4_ref[...]
    mean = y[:, :LANE]                      # split at lane 128 is free
    log_std = jnp.clip(y[:, LANE:], LOG_STD_MIN, LOG_STD_MAX)

    if deterministic:
        # action_sample = tanh(mean); Normal.log_prob(mean) has no quadratic term.
        x_pre = mean
        normal_lp = -log_std - _HALF_LOG_2PI
    else:
        # Lane-pad eps ([TB, A] block) to [TB, 128] through a small VMEM slab;
        # padded lanes are exactly zero so they contribute nothing downstream.
        eps_pad[...] = jnp.zeros_like(eps_pad)
        eps_pad[:, :action_dim] = eps_ref[...]
        eps = eps_pad[...]
        std = jnp.exp(log_std)
        x_pre = mean + std * eps            # rsample
        normal_lp = -0.5 * eps * eps - log_std - _HALF_LOG_2PI

    # tanh + TanhTransform log|det dy/dx| from a single EUP exp:
    #   e = exp(-2|x|);  tanh(x) = sign(x)*(1-e)/(1+e)
    #   softplus(-2x) = max(-2x, 0) + log1p(e)
    #   log_det = 2*(log 2 - x - softplus(-2x))            (stable form)
    e = jnp.exp(-2.0 * jnp.abs(x_pre))
    sign = jnp.where(x_pre >= 0.0, 1.0, -1.0)
    tanh_x = sign * (1.0 - e) * pl.reciprocal(1.0 + e, approx=True)
    softplus_m2x = jnp.maximum(-2.0 * x_pre, 0.0) + jnp.log1p(e)
    log_det = 2.0 * (_LOG_2 - x_pre - softplus_m2x)

    # Mask out the lane-padded columns before reducing over the action dim.
    col = lax.broadcasted_iota(jnp.int32, mean.shape, 1)
    valid = col < action_dim
    logp = jnp.sum(jnp.where(valid, normal_lp - log_det, 0.0),
                   axis=-1, keepdims=True)

    # Pack actions (cols [0, A)) and log_prob (col A) into one lane-dense slab.
    packed = jnp.where(valid, max_action * tanh_x,
                       jnp.where(col == action_dim, logp, 0.0))
    out_ref[...] = packed.astype(out_ref.dtype)


# ----------------------------------------------------------------------------
# Parameter construction / preparation (done once, cached across calls)
# ----------------------------------------------------------------------------
def init_policy_params(key, state_dim: int, action_dim: int,
                       log_std_multiplier: float = 1.0,
                       log_std_offset: float = -1.0):
    """Deterministic synthetic init (weights stored as [in, out])."""
    ks = jax.random.split(key, 9)

    def xavier(k, fan_in, fan_out, gain=1.0):
        bound = gain * math.sqrt(6.0 / (fan_in + fan_out))
        return jax.random.uniform(k, (fan_in, fan_out), jnp.float32, -bound, bound)

    w1 = xavier(ks[0], state_dim, HIDDEN)
    b1 = jax.random.uniform(ks[1], (1, HIDDEN), jnp.float32, -0.05, 0.05)
    w2 = xavier(ks[2], HIDDEN, HIDDEN)
    b2 = jax.random.uniform(ks[3], (1, HIDDEN), jnp.float32, -0.05, 0.05)
    w3 = xavier(ks[4], HIDDEN, HIDDEN)
    b3 = jax.random.uniform(ks[5], (1, HIDDEN), jnp.float32, -0.05, 0.05)
    # last layer: xavier_uniform with gain=0.01 (init_module_weights(..., False))
    w4 = xavier(ks[6], HIDDEN, 2 * action_dim, gain=0.01)
    b4 = jax.random.uniform(ks[7], (1, 2 * action_dim), jnp.float32, -0.05, 0.05)

    return dict(
        w1=w1, b1=b1, w2=w2, b2=b2, w3=w3, b3=b3,
        w4_mean=w4[:, :action_dim], b4_mean=b4[:, :action_dim],
        w4_logstd=w4[:, action_dim:], b4_logstd=b4[:, action_dim:],
        log_std_multiplier=jnp.full((1, 1), log_std_multiplier, jnp.float32),
        log_std_offset=jnp.full((1, 1), log_std_offset, jnp.float32),
    )


def prepare_policy_params(params):
    """One-time weight prep: bf16 casts, fold log_std multiplier/offset into the
    head (exact: m*(hW+b)+o = h(mW)+(mb+o)), lane-pad + fuse the head into one
    [256, 256] weight.  Cache the result and reuse it across forward calls."""
    A = params["w4_mean"].shape[1]
    mult = params["log_std_multiplier"].reshape(())
    off = params["log_std_offset"].reshape(())

    w4m = jnp.zeros((HIDDEN, LANE), jnp.float32).at[:, :A].set(params["w4_mean"])
    b4m = jnp.zeros((1, LANE), jnp.float32).at[:, :A].set(
        params["b4_mean"].reshape(1, A))
    w4s = jnp.zeros((HIDDEN, LANE), jnp.float32).at[:, :A].set(
        params["w4_logstd"] * mult)
    b4s = jnp.zeros((1, LANE), jnp.float32).at[:, :A].set(
        params["b4_logstd"].reshape(1, A) * mult + off)

    return dict(
        w1=params["w1"].astype(jnp.bfloat16), b1=params["b1"],
        w2=params["w2"].astype(jnp.bfloat16), b2=params["b2"],
        w3=params["w3"].astype(jnp.bfloat16), b3=params["b3"],
        w4=jnp.concatenate([w4m, w4s], axis=1).astype(jnp.bfloat16),
        b4=jnp.concatenate([b4m, b4s], axis=1),
    )


# ----------------------------------------------------------------------------
# Forward wrapper
# ----------------------------------------------------------------------------
@functools.partial(jax.jit,
                   static_argnames=("action_dim", "max_action", "deterministic"))
def _forward_impl(prepared, observations, eps, *, action_dim, max_action,
                  deterministic):
    B, state_dim = observations.shape
    A = action_dim
    assert A + 1 <= LANE, "packed output requires action_dim < 128"

    # Batch tile: >= 2 tiles whenever B > 8 (so the "parallel" axis shards across
    # v7x's two TensorCores), capped at 1024 rows (amortizes the ~0.35us/step
    # pipeline overhead while staying well inside v7x's 64 MiB VMEM).
    if B <= 8:
        TB = _round_up(B, 8)
    else:
        TB = min(1024, _round_up(pl.cdiv(B, 2), 8))
    B_pad = _round_up(B, TB)
    grid = (B_pad // TB,)

    # Skip padding entirely when B is already tile-aligned; otherwise one pad op.
    obs_p = observations if B_pad == B else jnp.pad(
        observations, ((0, B_pad - B), (0, 0)))

    kernel = functools.partial(_policy_kernel,
                               deterministic=deterministic,
                               max_action=float(max_action),
                               action_dim=A)

    # Weights/biases: constant block index -> stay VMEM-resident across steps.
    weight_specs = [
        pl.BlockSpec((state_dim, HIDDEN), lambda i: (0, 0)),   # w1
        pl.BlockSpec((1, HIDDEN), lambda i: (0, 0)),           # b1
        pl.BlockSpec((HIDDEN, HIDDEN), lambda i: (0, 0)),      # w2
        pl.BlockSpec((1, HIDDEN), lambda i: (0, 0)),           # b2
        pl.BlockSpec((HIDDEN, HIDDEN), lambda i: (0, 0)),      # w3
        pl.BlockSpec((1, HIDDEN), lambda i: (0, 0)),           # b3
        pl.BlockSpec((HIDDEN, 2 * LANE), lambda i: (0, 0)),    # w4 (fused head)
        pl.BlockSpec((1, 2 * LANE), lambda i: (0, 0)),         # b4
    ]
    weights = (prepared["w1"], prepared["b1"], prepared["w2"], prepared["b2"],
               prepared["w3"], prepared["b3"], prepared["w4"], prepared["b4"])

    if deterministic:
        # No eps input at all -> no dead DMA on the deterministic path.
        in_specs = [pl.BlockSpec((TB, state_dim), lambda i: (i, 0))] + weight_specs
        inputs = (obs_p,) + weights
        scratch_shapes = []
        n_transc = 2
        eps_bytes = 0
    else:
        eps_p = eps if B_pad == B else jnp.pad(eps, ((0, B_pad - B), (0, 0)))
        in_specs = [pl.BlockSpec((TB, state_dim), lambda i: (i, 0)),
                    pl.BlockSpec((TB, A), lambda i: (i, 0))] + weight_specs
        inputs = (obs_p, eps_p) + weights
        scratch_shapes = [pltpu.VMEM((TB, LANE), jnp.float32)]   # eps lane-pad slab
        n_transc = 3
        eps_bytes = 4 * B_pad * A

    flops = 2 * B_pad * (state_dim * HIDDEN + 2 * HIDDEN * HIDDEN
                         + HIDDEN * 2 * LANE)
    bytes_accessed = (4 * B_pad * state_dim + eps_bytes + 4 * B_pad * LANE
                      + sum(int(w.size) * w.dtype.itemsize for w in weights))
    cost = pl.CostEstimate(flops=flops,
                           transcendentals=n_transc * B_pad * LANE,
                           bytes_accessed=bytes_accessed)

    out = pl.pallas_call(
        kernel,
        out_shape=jax.ShapeDtypeStruct((B_pad, LANE), jnp.float32),
        grid_spec=pltpu.PrefetchScalarGridSpec(
            num_scalar_prefetch=0,
            grid=grid,
            in_specs=in_specs,
            out_specs=pl.BlockSpec((TB, LANE), lambda i: (i, 0)),
            scratch_shapes=scratch_shapes,
        ),
        compiler_params=pltpu.CompilerParams(
            dimension_semantics=("parallel",),
            vmem_limit_bytes=32 * 1024 * 1024),
        cost_estimate=cost,
    )(*inputs)

    actions = out[:B, :A]
    log_probs = out[:B, A]
    return actions, log_probs


def tanh_gaussian_policy_forward(prepared, observations, eps=None, *,
                                 action_dim, max_action=1.0,
                                 deterministic=False):
    """observations: [B, state_dim] f32; eps: [B, action_dim] f32 N(0,1) noise
    (ignored / may be None when deterministic=True).

    Returns (actions [B, action_dim], log_probs [B])."""
    if deterministic:
        eps = None
    return _forward_impl(prepared, observations, eps,
                         action_dim=int(action_dim),
                         max_action=float(max_action),
                         deterministic=bool(deterministic))


# ----------------------------------------------------------------------------
# Pure-JAX reference (mirrors the PyTorch module's forward)
# ----------------------------------------------------------------------------
def _reference_forward(params, observations, eps, max_action, deterministic):
    h = jnp.maximum(observations @ params["w1"] + params["b1"], 0.0)
    h = jnp.maximum(h @ params["w2"] + params["b2"], 0.0)
    h = jnp.maximum(h @ params["w3"] + params["b3"], 0.0)
    mean = h @ params["w4_mean"] + params["b4_mean"]
    log_std = h @ params["w4_logstd"] + params["b4_logstd"]
    log_std = (params["log_std_multiplier"].reshape(()) * log_std
               + params["log_std_offset"].reshape(()))
    log_std = jnp.clip(log_std, LOG_STD_MIN, LOG_STD_MAX)
    std = jnp.exp(log_std)
    if deterministic:
        x_pre = mean
        eps_eff = jnp.zeros_like(mean)
    else:
        x_pre = mean + std * eps
        eps_eff = eps
    action = jnp.tanh(x_pre)
    normal_lp = -0.5 * eps_eff * eps_eff - log_std - _HALF_LOG_2PI
    z = -2.0 * x_pre
    sp = jnp.maximum(z, 0.0) + jnp.log1p(jnp.exp(-jnp.abs(z)))
    log_det = 2.0 * (_LOG_2 - x_pre - sp)
    logp = jnp.sum(normal_lp - log_det, axis=-1)
    return max_action * action, logp


# ----------------------------------------------------------------------------
# Self-test
# ----------------------------------------------------------------------------
if __name__ == "__main__":
    key = jax.random.PRNGKey(0)
    k_param, k_obs, k_eps, k_obs2, k_eps2 = jax.random.split(key, 5)

    B, STATE_DIM, ACTION_DIM = 2, 16, 6
    MAX_ACTION = 1.0

    params = init_policy_params(k_param, STATE_DIM, ACTION_DIM)
    prepared = prepare_policy_params(params)          # hoisted weight prep
    prepared = jax.block_until_ready(prepared)

    observations = jax.random.normal(k_obs, (B, STATE_DIM), jnp.float32)
    eps = jax.random.normal(k_eps, (B, ACTION_DIM), jnp.float32)

    # --- stochastic (rsample) path ---
    actions, log_probs = tanh_gaussian_policy_forward(
        prepared, observations, eps, action_dim=ACTION_DIM,
        max_action=MAX_ACTION, deterministic=False)
    jax.block_until_ready((actions, log_probs))
    assert actions.shape == (B, ACTION_DIM)
    assert log_probs.shape == (B,)
    assert bool(jnp.all(jnp.isfinite(actions)))
    assert bool(jnp.all(jnp.isfinite(log_probs)))

    ref_a, ref_lp = _reference_forward(params, observations, eps, MAX_ACTION, False)
    assert bool(jnp.max(jnp.abs(actions - ref_a)) < 5e-2), "actions mismatch"
    assert bool(jnp.max(jnp.abs(log_probs - ref_lp)) < 5e-1), "log_probs mismatch"

    # --- deterministic path (tanh(mean); eps is not an input at all) ---
    det_actions, det_logp = tanh_gaussian_policy_forward(
        prepared, observations, action_dim=ACTION_DIM,
        max_action=MAX_ACTION, deterministic=True)
    jax.block_until_ready((det_actions, det_logp))
    ref_da, ref_dlp = _reference_forward(params, observations, eps, MAX_ACTION, True)
    assert bool(jnp.max(jnp.abs(det_actions - ref_da)) < 5e-2)
    assert bool(jnp.max(jnp.abs(det_logp - ref_dlp)) < 5e-1)
    assert bool(jnp.all(jnp.isfinite(det_actions)))
    assert bool(jnp.all(jnp.isfinite(det_logp)))

    # --- multi-tile path: grid >= 2 + ragged last-tile padding ---
    B2 = 33
    obs2 = jax.random.normal(k_obs2, (B2, STATE_DIM), jnp.float32)
    eps2 = jax.random.normal(k_eps2, (B2, ACTION_DIM), jnp.float32)
    a2, lp2 = tanh_gaussian_policy_forward(
        prepared, obs2, eps2, action_dim=ACTION_DIM,
        max_action=MAX_ACTION, deterministic=False)
    jax.block_until_ready((a2, lp2))
    r_a2, r_lp2 = _reference_forward(params, obs2, eps2, MAX_ACTION, False)
    assert a2.shape == (B2, ACTION_DIM) and lp2.shape == (B2,)
    assert bool(jnp.max(jnp.abs(a2 - r_a2)) < 5e-2), "multi-tile actions mismatch"
    assert bool(jnp.max(jnp.abs(lp2 - r_lp2)) < 5e-1), "multi-tile log_probs mismatch"

    print("KERNEL_OK")
</pallas_src>

<mosaic_0001>
module attributes {stable_mosaic.version = 11 : i64} {
  func.func @_policy_kernel(%arg0: i32, %arg1: memref<8x16xf32, #tpu.memory_space<vmem>>, %arg2: memref<8x6xf32, #tpu.memory_space<vmem>>, %arg3: memref<16x256xbf16, #tpu.memory_space<vmem>>, %arg4: memref<1x256xf32, #tpu.memory_space<vmem>>, %arg5: memref<256x256xbf16, #tpu.memory_space<vmem>>, %arg6: memref<1x256xf32, #tpu.memory_space<vmem>>, %arg7: memref<256x256xbf16, #tpu.memory_space<vmem>>, %arg8: memref<1x256xf32, #tpu.memory_space<vmem>>, %arg9: memref<256x256xbf16, #tpu.memory_space<vmem>>, %arg10: memref<1x256xf32, #tpu.memory_space<vmem>>, %arg11: memref<8x128xf32, #tpu.memory_space<vmem>>, %arg12: memref<8x128xf32, #tpu.memory_space<vmem>>) attributes {dimension_semantics = [#tpu.dimension_semantics<parallel>], iteration_bounds = array<i64: 1>, scalar_prefetch = 0 : i64, scratch_operands = 1 : i64, tpu.core_type = #tpu.core_type<tc>, window_params = [{transform_indices = @transform_0, window_bounds = array<i64: 8, 16>}, {transform_indices = @transform_1, window_bounds = array<i64: 8, 6>}, {pipeline_mode = #tpu.pipeline_mode<synchronous>, transform_indices = @transform_2, window_bounds = array<i64: 16, 256>}, {pipeline_mode = #tpu.pipeline_mode<synchronous>, transform_indices = @transform_3, window_bounds = array<i64: 1, 256>}, {pipeline_mode = #tpu.pipeline_mode<synchronous>, transform_indices = @transform_4, window_bounds = array<i64: 256, 256>}, {pipeline_mode = #tpu.pipeline_mode<synchronous>, transform_indices = @transform_5, window_bounds = array<i64: 1, 256>}, {pipeline_mode = #tpu.pipeline_mode<synchronous>, transform_indices = @transform_6, window_bounds = array<i64: 256, 256>}, {pipeline_mode = #tpu.pipeline_mode<synchronous>, transform_indices = @transform_7, window_bounds = array<i64: 1, 256>}, {pipeline_mode = #tpu.pipeline_mode<synchronous>, transform_indices = @transform_8, window_bounds = array<i64: 256, 256>}, {pipeline_mode = #tpu.pipeline_mode<synchronous>, transform_indices = @transform_9, window_bounds = array<i64: 1, 256>}, {transform_indices = @transform_10, window_bounds = array<i64: 8, 128>}]} {
    %c0 = arith.constant 0 : index
    %c0_0 = arith.constant 0 : index
    %0 = vector.load %arg1[%c0, %c0_0] : memref<8x16xf32, #tpu.memory_space<vmem>>, vector<8x16xf32>
    %1 = arith.truncf %0 : vector<8x16xf32> to vector<8x16xbf16>
    %c0_1 = arith.constant 0 : index
    %c0_2 = arith.constant 0 : index
    %2 = vector.load %arg3[%c0_1, %c0_2] : memref<16x256xbf16, #tpu.memory_space<vmem>>, vector<16x256xbf16>
    %cst = arith.constant dense<0.000000e+00> : vector<8x256xf32>
    %3 = tpu.matmul %1, %2, %cst {dimension_numbers = #tpu.dot_dimension_numbers<[1], [0], [0], [1], [0, 0, 1, 1], [], []>} : vector<8x16xbf16>, vector<16x256xbf16>, vector<8x256xf32> -> vector<8x256xf32>
    %c0_3 = arith.constant 0 : index
    %c0_4 = arith.constant 0 : index
    %4 = vector.load %arg4[%c0_3, %c0_4] : memref<1x256xf32, #tpu.memory_space<vmem>>, vector<1x256xf32>
    %5 = vector.broadcast %4 : vector<1x256xf32> to vector<8x256xf32>
    %6 = arith.addf %3, %5 : vector<8x256xf32>
    %cst_5 = arith.constant 0.000000e+00 : f32
    %7 = vector.broadcast %cst_5 : f32 to vector<8x256xf32>
    %8 = arith.maximumf %6, %7 : vector<8x256xf32>
    %9 = arith.truncf %8 : vector<8x256xf32> to vector<8x256xbf16>
    %c0_6 = arith.constant 0 : index
    %c0_7 = arith.constant 0 : index
    %10 = vector.load %arg5[%c0_6, %c0_7] : memref<256x256xbf16, #tpu.memory_space<vmem>>, vector<256x256xbf16>
    %cst_8 = arith.constant dense<0.000000e+00> : vector<8x256xf32>
    %11 = tpu.matmul %9, %10, %cst_8 {dimension_numbers = #tpu.dot_dimension_numbers<[1], [0], [0], [1], [0, 0, 1, 1], [], []>} : vector<8x256xbf16>, vector<256x256xbf16>, vector<8x256xf32> -> vector<8x256xf32>
    %c0_9 = arith.constant 0 : index
    %c0_10 = arith.constant 0 : index
    %12 = vector.load %arg6[%c0_9, %c0_10] : memref<1x256xf32, #tpu.memory_space<vmem>>, vector<1x256xf32>
    %13 = vector.broadcast %12 : vector<1x256xf32> to vector<8x256xf32>
    %14 = arith.addf %11, %13 : vector<8x256xf32>
    %cst_11 = arith.constant 0.000000e+00 : f32
    %15 = vector.broadcast %cst_11 : f32 to vector<8x256xf32>
    %16 = arith.maximumf %14, %15 : vector<8x256xf32>
    %17 = arith.truncf %16 : vector<8x256xf32> to vector<8x256xbf16>
    %c0_12 = arith.constant 0 : index
    %c0_13 = arith.constant 0 : index
    %18 = vector.load %arg7[%c0_12, %c0_13] : memref<256x256xbf16, #tpu.memory_space<vmem>>, vector<256x256xbf16>
    %cst_14 = arith.constant dense<0.000000e+00> : vector<8x256xf32>
    %19 = tpu.matmul %17, %18, %cst_14 {dimension_numbers = #tpu.dot_dimension_numbers<[1], [0], [0], [1], [0, 0, 1, 1], [], []>} : vector<8x256xbf16>, vector<256x256xbf16>, vector<8x256xf32> -> vector<8x256xf32>
    %c0_15 = arith.constant 0 : index
    %c0_16 = arith.constant 0 : index
    %20 = vector.load %arg8[%c0_15, %c0_16] : memref<1x256xf32, #tpu.memory_space<vmem>>, vector<1x256xf32>
    %21 = vector.broadcast %20 : vector<1x256xf32> to vector<8x256xf32>
    %22 = arith.addf %19, %21 : vector<8x256xf32>
    %cst_17 = arith.constant 0.000000e+00 : f32
    %23 = vector.broadcast %cst_17 : f32 to vector<8x256xf32>
    %24 = arith.maximumf %22, %23 : vector<8x256xf32>
    %25 = arith.truncf %24 : vector<8x256xf32> to vector<8x256xbf16>
    %c0_18 = arith.constant 0 : index
    %c0_19 = arith.constant 0 : index
    %26 = vector.load %arg9[%c0_18, %c0_19] : memref<256x256xbf16, #tpu.memory_space<vmem>>, vector<256x256xbf16>
    %cst_20 = arith.constant dense<0.000000e+00> : vector<8x256xf32>
    %27 = tpu.matmul %25, %26, %cst_20 {dimension_numbers = #tpu.dot_dimension_numbers<[1], [0], [0], [1], [0, 0, 1, 1], [], []>} : vector<8x256xbf16>, vector<256x256xbf16>, vector<8x256xf32> -> vector<8x256xf32>
    %c0_21 = arith.constant 0 : index
    %c0_22 = arith.constant 0 : index
    %28 = vector.load %arg10[%c0_21, %c0_22] : memref<1x256xf32, #tpu.memory_space<vmem>>, vector<1x256xf32>
    %29 = vector.broadcast %28 : vector<1x256xf32> to vector<8x256xf32>
    %30 = arith.addf %27, %29 : vector<8x256xf32>
    %31 = vector.extract_strided_slice %30 {offsets = [0, 0], sizes = [8, 128], strides = [1, 1]} : vector<8x256xf32> to vector<8x128xf32>
    %32 = vector.extract_strided_slice %30 {offsets = [0, 128], sizes = [8, 128], strides = [1, 1]} : vector<8x256xf32> to vector<8x128xf32>
    %cst_23 = arith.constant -2.000000e+01 : f32
    %cst_24 = arith.constant 2.000000e+00 : f32
    %33 = vector.broadcast %cst_23 : f32 to vector<8x128xf32>
    %34 = arith.maximumf %33, %32 : vector<8x128xf32>
    %35 = vector.broadcast %cst_24 : f32 to vector<8x128xf32>
    %36 = arith.minimumf %35, %34 : vector<8x128xf32>
    %cst_25 = arith.constant 0.000000e+00 : f32
    %37 = vector.broadcast %cst_25 : f32 to vector<8x128xf32>
    %c0_26 = arith.constant 0 : index
    %c0_27 = arith.constant 0 : index
    %38 = vector.load %arg12[%c0_26, %c0_27] : memref<8x128xf32, #tpu.memory_space<vmem>>, vector<8x128xf32>
    tpu.vector_store %arg12[%c0_26, %c0_27], %37 {strides = array<i32>} : memref<8x128xf32, #tpu.memory_space<vmem>>, vector<8x128xf32>,
    %c0_28 = arith.constant 0 : index
    %c0_29 = arith.constant 0 : index
    %39 = vector.load %arg2[%c0_28, %c0_29] : memref<8x6xf32, #tpu.memory_space<vmem>>, vector<8x6xf32>
    %c0_30 = arith.constant 0 : index
    %c0_31 = arith.constant 0 : index
    %40 = vector.load %arg12[%c0_30, %c0_31] : memref<8x128xf32, #tpu.memory_space<vmem>>, vector<8x6xf32>
    tpu.vector_store %arg12[%c0_30, %c0_31], %39 {strides = array<i32>} : memref<8x128xf32, #tpu.memory_space<vmem>>, vector<8x6xf32>,
    %c0_32 = arith.constant 0 : index
    %c0_33 = arith.constant 0 : index
    %41 = vector.load %arg12[%c0_32, %c0_33] : memref<8x128xf32, #tpu.memory_space<vmem>>, vector<8x128xf32>
    %42 = math.exp %36 : vector<8x128xf32>
    %43 = arith.mulf %42, %41 : vector<8x128xf32>
    %44 = arith.addf %31, %43 : vector<8x128xf32>
    %cst_34 = arith.constant -5.000000e-01 : f32
    %45 = vector.broadcast %cst_34 : f32 to vector<8x128xf32>
    %46 = arith.mulf %45, %41 : vector<8x128xf32>
    %47 = arith.mulf %46, %41 : vector<8x128xf32>
    %48 = arith.subf %47, %36 : vector<8x128xf32>
    %cst_35 = arith.constant 0.918938517 : f32
    %49 = vector.broadcast %cst_35 : f32 to vector<8x128xf32>
    %50 = arith.subf %48, %49 : vector<8x128xf32>
    %51 = math.absf %44 : vector<8x128xf32>
    %cst_36 = arith.constant -2.000000e+00 : f32
    %52 = vector.broadcast %cst_36 : f32 to vector<8x128xf32>
    %53 = arith.mulf %52, %51 : vector<8x128xf32>
    %54 = math.exp %53 : vector<8x128xf32>
    %cst_37 = arith.constant 0.000000e+00 : f32
    %55 = vector.broadcast %cst_37 : f32 to vector<8x128xf32>
    %56 = arith.cmpf oge, %44, %55 : vector<8x128xf32>
    %cst_38 = arith.constant 1.000000e+00 : f32
    %cst_39 = arith.constant -1.000000e+00 : f32
    %57 = vector.broadcast %cst_38 : f32 to vector<8x128xf32>
    %58 = vector.broadcast %cst_39 : f32 to vector<8x128xf32>
    %59 = arith.select %56, %57, %58 : vector<8x128xi1>, vector<8x128xf32>
    %cst_40 = arith.constant 1.000000e+00 : f32
    %60 = vector.broadcast %cst_40 : f32 to vector<8x128xf32>
    %61 = arith.subf %60, %54 : vector<8x128xf32>
    %62 = arith.mulf %59, %61 : vector<8x128xf32>
    %cst_41 = arith.constant 1.000000e+00 : f32
    %63 = vector.broadcast %cst_41 : f32 to vector<8x128xf32>
    %64 = arith.addf %63, %54 : vector<8x128xf32>
    %65 = tpu.reciprocal %64 {approx = true} : vector<8x128xf32> -> vector<8x128xf32>
    %66 = arith.mulf %62, %65 : vector<8x128xf32>
    %cst_42 = arith.constant -2.000000e+00 : f32
    %67 = vector.broadcast %cst_42 : f32 to vector<8x128xf32>
    %68 = arith.mulf %67, %44 : vector<8x128xf32>
    %cst_43 = arith.constant 0.000000e+00 : f32
    %69 = vector.broadcast %cst_43 : f32 to vector<8x128xf32>
    %70 = arith.maximumf %68, %69 : vector<8x128xf32>
    %71 = math.log1p %54 : vector<8x128xf32>
    %72 = arith.addf %70, %71 : vector<8x128xf32>
    %cst_44 = arith.constant 0.693147182 : f32
    %73 = vector.broadcast %cst_44 : f32 to vector<8x128xf32>
    %74 = arith.subf %73, %44 : vector<8x128xf32>
    %75 = arith.subf %74, %72 : vector<8x128xf32>
    %cst_45 = arith.constant 2.000000e+00 : f32
    %76 = vector.broadcast %cst_45 : f32 to vector<8x128xf32>
    %77 = arith.mulf %76, %75 : vector<8x128xf32>
    %78 = tpu.iota {dimensions = array<i32: 1>} : vector<8x128xi32>
    %c6_i32 = arith.constant 6 : i32
    %79 = vector.broadcast %c6_i32 : i32 to vector<8x128xi32>
    %80 = arith.cmpi slt, %78, %79 : vector<8x128xi32>
    %81 = arith.subf %50, %77 : vector<8x128xf32>
    %cst_46 = arith.constant 0.000000e+00 : f32
    %82 = vector.broadcast %cst_46 : f32 to vector<8x128xf32>
    %83 = arith.select %80, %81, %82 : vector<8x128xi1>, vector<8x128xf32>
    %cst_47 = arith.constant dense<0.000000e+00> : vector<8xf32>
    %84 = vector.multi_reduction <add>, %83, %cst_47 [1] : vector<8x128xf32> to vector<8xf32>
    %85 = vector.shape_cast %84 : vector<8xf32> to vector<8x1xf32>
    %cst_48 = arith.constant 1.000000e+00 : f32
    %86 = vector.broadcast %cst_48 : f32 to vector<8x128xf32>
    %87 = arith.mulf %86, %66 : vector<8x128xf32>
    %c6_i32_49 = arith.constant 6 : i32
    %88 = vector.broadcast %c6_i32_49 : i32 to vector<8x128xi32>
    %89 = arith.cmpi eq, %78, %88 : vector<8x128xi32>
    %cst_50 = arith.constant 0.000000e+00 : f32
    %90 = vector.shape_cast %85 : vector<8x1xf32> to vector<8x1xf32>
    %91 = vector.broadcast %90 : vector<8x1xf32> to vector<8x128xf32>
    %92 = vector.broadcast %cst_50 : f32 to vector<8x128xf32>
    %93 = arith.select %89, %91, %92 : vector<8x128xi1>, vector<8x128xf32>
    %94 = arith.select %80, %87, %93 : vector<8x128xi1>, vector<8x128xf32>
    %c0_51 = arith.constant 0 : index
    %c0_52 = arith.constant 0 : index
    %95 = vector.load %arg11[%c0_51, %c0_52] : memref<8x128xf32, #tpu.memory_space<vmem>>, vector<8x128xf32>
    tpu.vector_store %arg11[%c0_51, %c0_52], %94 {strides = array<i32>} : memref<8x128xf32, #tpu.memory_space<vmem>>, vector<8x128xf32>,
    return
  }
  func.func @transform_0(%arg0: i32) -> (i32, i32) {
    %c0_i32 = arith.constant 0 : i32
    %c0_i32_0 = arith.constant 0 : i32
    return %arg0, %c0_i32 : i32, i32
  }
  func.func @transform_1(%arg0: i32) -> (i32, i32) {
    %c0_i32 = arith.constant 0 : i32
    %c0_i32_0 = arith.constant 0 : i32
    return %arg0, %c0_i32 : i32, i32
  }
  func.func @transform_2(%arg0: i32) -> (i32, i32) {
    %c0_i32 = arith.constant 0 : i32
    %c0_i32_0 = arith.constant 0 : i32
    %c0_i32_1 = arith.constant 0 : i32
    return %c0_i32, %c0_i32_0 : i32, i32
  }
  func.func @transform_3(%arg0: i32) -> (i32, i32) {
    %c0_i32 = arith.constant 0 : i32
    %c0_i32_0 = arith.constant 0 : i32
    %c0_i32_1 = arith.constant 0 : i32
    return %c0_i32, %c0_i32_0 : i32, i32
  }
  func.func @transform_4(%arg0: i32) -> (i32, i32) {
    %c0_i32 = arith.constant 0 : i32
    %c0_i32_0 = arith.constant 0 : i32
    %c0_i32_1 = arith.constant 0 : i32
    return %c0_i32, %c0_i32_0 : i32, i32
  }
  func.func @transform_5(%arg0: i32) -> (i32, i32) {
    %c0_i32 = arith.constant 0 : i32
    %c0_i32_0 = arith.constant 0 : i32
    %c0_i32_1 = arith.constant 0 : i32
    return %c0_i32, %c0_i32_0 : i32, i32
  }
  func.func @transform_6(%arg0: i32) -> (i32, i32) {
    %c0_i32 = arith.constant 0 : i32
    %c0_i32_0 = arith.constant 0 : i32
    %c0_i32_1 = arith.constant 0 : i32
    return %c0_i32, %c0_i32_0 : i32, i32
  }
  func.func @transform_7(%arg0: i32) -> (i32, i32) {
    %c0_i32 = arith.constant 0 : i32
    %c0_i32_0 = arith.constant 0 : i32
    %c0_i32_1 = arith.constant 0 : i32
    return %c0_i32, %c0_i32_0 : i32, i32
  }
  func.func @transform_8(%arg0: i32) -> (i32, i32) {
    %c0_i32 = arith.constant 0 : i32
    %c0_i32_0 = arith.constant 0 : i32
    %c0_i32_1 = arith.constant 0 : i32
    return %c0_i32, %c0_i32_0 : i32, i32
  }
  func.func @transform_9(%arg0: i32) -> (i32, i32) {
    %c0_i32 = arith.constant 0 : i32
    %c0_i32_0 = arith.constant 0 : i32
    %c0_i32_1 = arith.constant 0 : i32
    return %c0_i32, %c0_i32_0 : i32, i32
  }
  func.func @transform_10(%arg0: i32) -> (i32, i32) {
    %c0_i32 = arith.constant 0 : i32
    %c0_i32_0 = arith.constant 0 : i32
    return %arg0, %c0_i32 : i32, i32
  }
}

</mosaic_0001>

<bundles_post_ra>
// kernel: _forward_impl.1
= control target key start
LH: loop header
LB: loop body
LE: loop exit
PB: predicated region body
PF: predicated region fallthrough
CT: control target
= control target key end

     0   :  { %15 = vsyncpa [#allocation4], 0  ;;  %s1393_s0 = inlined_call_operand.vmem [shape: f32[8,16], index: 0, kind: input, shape index: {}]   ;;  %s1394_s1 = inlined_call_operand.vmem [shape: f32[8,6], index: 1, kind: input, shape index: {}]   ;;  %s1395_s2 = inlined_call_operand.vmem [shape: bf16[16,256], index: 2, kind: input, shape index: {}]   ;;  %s1396_s3 = inlined_call_operand.vmem [shape: f32[1,256], index: 3, kind: input, shape index: {}]   ;;  %s1397_s4 = inlined_call_operand.hbm [shape: bf16[256,256], index: 4, kind: input, shape index: {}]   ;;  %s1398_s5 = inlined_call_operand.vmem [shape: f32[1,256], index: 5, kind: input, shape index: {}]   ;;  %s1399_s6 = inlined_call_operand.hbm [shape: bf16[256,256], index: 6, kind: input, shape index: {}]   ;;  %s1400_s7 = inlined_call_operand.vmem [shape: f32[1,256], index: 7, kind: input, shape index: {}]   ;;  %s1401_s8 = inlined_call_operand.hbm [shape: bf16[256,256], index: 8, kind: input, shape index: {}]   ;;  %s1402_s9 = inlined_call_operand.vmem [shape: f32[1,256], index: 9, kind: input, shape index: {}]   ;;  %s1403_s10 = inlined_call_operand.vmem [shape: f32[8,128], index: 10, kind: output, shape index: {}]  }
   0x1   :  { %16 = vsyncpa [#allocation6], 0  ;;  %s1280_s13 = smov [#allocation5]   ;;  %s1281_s15 = smov [#allocation3]  }
   0x2   :  { %s44_s14 = sshll.u32 %s1280_s13, 4  ;;  %s30_s16 = sshll.u32 %s1281_s15, 4  ;;  %s45_s14 = int_to_ptr.vmem [resolvable:$true] %s44_s14  ;;  %s31_s16 = int_to_ptr.vmem [resolvable:$true] %s30_s16 }
   0x3   :  { %s1224_s17 = scalar_lea.vmem %s45_s14, 4096  ;;  %p1229_p1 = scmp.lt.s32.totalorder %s45_s14, %s45_s14 }
   0x4   :  { %p1225_p0 = scmp.ne.s32.totalorder %s45_s14, %s1224_s17  ;;  %p1230_p2 = scmp.lt.s32.totalorder %s1224_s17, %s1224_s17 }
   0x6   :  { %p1231_p3 = por %p1230_p2, %p1229_p1 }
   0x8   :  { %p1232_p4 = pnand %p1231_p3, %p1225_p0 }
   0xa   :  { %1235 = shalt.err (!%p1232_p4)
}
   0xb   :  { %s1282_s18 = smov 128   ;;  %s1283_s19 = smov 8  }
   0xc   :  { %50 = dma.hbm_to_vmem [thread:$0]  %s1399_s6, 4096, %s45_s14, [#allocation6], %s1282_s18, %s1282_s18, %s1283_s19  }
   0xd   :  { %s1244_s22 = scalar_lea.vmem %s31_s16, 4096  ;;  %p1249_p6 = scmp.lt.s32.totalorder %s31_s16, %s31_s16 }
   0xe   :  { %p1245_p5 = scmp.ne.s32.totalorder %s31_s16, %s1244_s22  ;;  %p1250_p7 = scmp.lt.s32.totalorder %s1244_s22, %s1244_s22 }
  0x10   :  { %p1251_p8 = por %p1250_p7, %p1249_p6 }
  0x12   :  { %p1252_p9 = pnand %p1251_p8, %p1245_p5 }
  0x14   :  { %1255 = shalt.err (!%p1252_p9)
}
  0x15   :  { %36 = dma.hbm_to_vmem [thread:$0]  %s1397_s4, 4096, %s31_s16, [#allocation4], %s1282_s18, %s1282_s18, %s1283_s19  }
  0x16   :  { %s1284_s25 = smov [#allocation7]  }
  0x17   :  { %s58_s26 = sshll.u32 %s1284_s25, 4  ;;  %s59_s26 = int_to_ptr.vmem [resolvable:$true] %s58_s26 }
  0x18   :  { %s1264_s27 = scalar_lea.vmem %s59_s26, 4096  ;;  %p1269_p11 = scmp.lt.s32.totalorder %s59_s26, %s59_s26 }
  0x19   :  { %p1265_p10 = scmp.ne.s32.totalorder %s59_s26, %s1264_s27  ;;  %p1270_p12 = scmp.lt.s32.totalorder %s1264_s27, %s1264_s27 }
  0x1b   :  { %p1271_p13 = por %p1270_p12, %p1269_p11 }
  0x1d   :  { %p1272_p0 = pnand %p1271_p13, %p1265_p10 }
  0x1f   :  { %1275 = shalt.err (!%p1272_p0)
}
  0x20   :  { %64 = dma.hbm_to_vmem [thread:$0]  %s1401_s8, 4096, %s59_s26, [#allocation6], %s1282_s18, %s1282_s18, %s1283_s19  }
  0x21   :  { %1276 = dma.done.wait [#allocation4], 4096  }
  0x22   :  { %1277 = vsyncadd [#allocation4], 4294963200 }
  0x23   :  { %1278 = dma.done.wait [#allocation6], 8192  }
  0x24   :  { %1279 = vsyncadd [#allocation6], 4294959104  ;;  %v1285_v0 = vmov 0   ;;  %v1061_v1 = vld [vmem:[%s1395_s2 + $0x4] ss:$8 sps:$4 sm:$0xff]   ;;  %vm103_vm0 = vcmask 130048  }
  0x25   :  { %139 = vmatprep.mubr.bf16.mxu0 %v1285_v0  ;;  %v1063_v2 = vld [vmem:[%s1395_s2] ss:$8 sps:$4 sm:$0xff]   ;;  %121 = vmatprep.subr.bf16.mxu0 %v1061_v1  ;;  %v1064_v5 = vld [vmem:[#allocation3 + $0x74] ss:$8 sps:$4 sm:$0xff]   ;;  %v1067_v7 = vld [vmem:[#allocation3 + $0x64] ss:$8 sps:$4 sm:$0xff]   ;;  %v83_v1 = vlaneseq }
  0x26   :  { %v77_v3 = vld [vmem:[%s1393_s0] sm:$0xff]  ;;  %122 = vmatpush1.bf16.msra.mxu0 %v1063_v2  ;;  %356 = vmatprep.subr.bf16.mxu1 %v1064_v5  ;;  %v1069_v8 = vld [vmem:[#allocation3 + $0x60] ss:$8 sps:$4 sm:$0xff]   ;;  %v1073_v11 = vld [vmem:[#allocation3 + $0x44] ss:$8 sps:$4 sm:$0xff]   ;;  %vm899_vm1 = vcmask 48128  }
  0x27   :  { %v78_v4 = vpack.c.bf16 %v77_v3, %v77_v3  ;;  %v1066_v6 = vld [vmem:[#allocation3 + $0x70] ss:$8 sps:$4 sm:$0xff]   ;;  %v1070_v9 = vld [vmem:[#allocation3 + $0x54] ss:$8 sps:$4 sm:$0xff]   ;;  %v1075_v12 = vld [vmem:[#allocation3 + $0x40] ss:$8 sps:$4 sm:$0xff]  }
  0x28   :  { %357 = vmatpush1.bf16.msra.mxu1 %v1066_v6  ;;  %v1072_v10 = vld [vmem:[#allocation3 + $0x50] ss:$8 sps:$4 sm:$0xff]   ;;  %v1076_v13 = vld [vmem:[#allocation3 + $0x34] ss:$8 sps:$4 sm:$0xff]   ;;  %v1079_v15 = vld [vmem:[#allocation3 + $0x24] ss:$8 sps:$4 sm:$0xff]  }
  0x29   :  { %955 = vmatmul.mubr.msk.bf16.vlgmr.msra.gmra.mxu0 %vm103_vm0, %v78_v4  ;;  %358 = vmatprep.subr.bf16.mxu1 %v1067_v7  ;;  %v1078_v14 = vld [vmem:[#allocation3 + $0x30] ss:$8 sps:$4 sm:$0xff]   ;;  %v1081_v16 = vld [vmem:[#allocation3 + $0x20] ss:$8 sps:$4 sm:$0xff]   ;;  %v1082_v17 = vld [vmem:[#allocation3 + $0x14] ss:$8 sps:$4 sm:$0xff]  }
  0x2a   :  { %v1084_v18 = vld [vmem:[#allocation3 + $0x10] ss:$8 sps:$4 sm:$0xff]   ;;  %v1085_v19 = vld [vmem:[#allocation3 + $0x4] ss:$8 sps:$4 sm:$0xff]   ;;  %v1087_v20 = vld [vmem:[#allocation3] ss:$8 sps:$4 sm:$0xff]  }
  0x2b   :  { %v1088_v21 = vld [vmem:[#allocation3 + $0xf4] ss:$8 sps:$4 sm:$0xff]   ;;  %v1090_v22 = vld [vmem:[#allocation3 + $0xf0] ss:$8 sps:$4 sm:$0xff]   ;;  %v1091_v23 = vld [vmem:[#allocation3 + $0xe4] ss:$8 sps:$4 sm:$0xff]  }
  0x2c   :  { %359 = vmatpush1.bf16.msra.mxu1 %v1069_v8  ;;  %v1093_v24 = vld [vmem:[#allocation3 + $0xe0] ss:$8 sps:$4 sm:$0xff]   ;;  %v1094_v25 = vld [vmem:[#allocation3 + $0xd4] ss:$8 sps:$4 sm:$0xff]   ;;  %v1096_v26 = vld [vmem:[#allocation3 + $0xd0] ss:$8 sps:$4 sm:$0xff]  }
  0x2d   :  { %360 = vmatprep.subr.bf16.mxu1 %v1070_v9  ;;  %v1097_v27 = vld [vmem:[#allocation3 + $0xc4] ss:$8 sps:$4 sm:$0xff]   ;;  %v1099_v28 = vld [vmem:[#allocation3 + $0xc0] ss:$8 sps:$4 sm:$0xff]   ;;  %v1100_v29 = vld [vmem:[#allocation3 + $0xb4] ss:$8 sps:$4 sm:$0xff]  }
  0x2e   :  { %v1102_v30 = vld [vmem:[#allocation3 + $0xb0] ss:$8 sps:$4 sm:$0xff]   ;;  %v1103_v31 = vld [vmem:[#allocation3 + $0xa4] ss:$8 sps:$4 sm:$0xff]   ;;  %v1105_v32 = vld [vmem:[#allocation3 + $0xa0] ss:$8 sps:$4 sm:$0xff]  }
  0x2f   :  { %v1106_v33 = vld [vmem:[#allocation3 + $0x94] ss:$8 sps:$4 sm:$0xff]   ;;  %v1108_v34 = vld [vmem:[#allocation3 + $0x90] ss:$8 sps:$4 sm:$0xff]   ;;  %v1109_v35 = vld [vmem:[#allocation3 + $0x84] ss:$8 sps:$4 sm:$0xff]  }
  0x30   :  { %361 = vmatpush1.bf16.msra.mxu1 %v1072_v10  ;;  %v1111_v36 = vld [vmem:[#allocation3 + $0x80] ss:$8 sps:$4 sm:$0xff]   ;;  %v1112_v37 = vld [vmem:[#allocation5 + $0x70] ss:$8 sps:$4 sm:$0xff]   ;;  %v1114_v38 = vld [vmem:[#allocation5 + $0x74] ss:$8 sps:$4 sm:$0xff]  }
  0x31   :  { %362 = vmatprep.subr.bf16.mxu1 %v1073_v11  ;;  %v1117_v39 = vld [vmem:[#allocation5 + $0x64] ss:$8 sps:$4 sm:$0xff]   ;;  %605 = vmatprep.subr.bf16.mxu0 %v1114_v38  ;;  %v1115_v40 = vld [vmem:[#allocation5 + $0x60] ss:$8 sps:$4 sm:$0xff]   ;;  %v1120_v41 = vld [vmem:[#allocation5 + $0x54] ss:$8 sps:$4 sm:$0xff]  }
  0x32   :  { %606 = vmatpush1.bf16.msra.mxu0 %v1112_v37  ;;  %v1118_v42 = vld [vmem:[#allocation5 + $0x50] ss:$8 sps:$4 sm:$0xff]   ;;  %v1123_v43 = vld [vmem:[#allocation5 + $0x44] ss:$8 sps:$4 sm:$0xff]   ;;  %v1121_v44 = vld [vmem:[#allocation5 + $0x40] ss:$8 sps:$4 sm:$0xff]  }
  0x33   :  { %607 = vmatprep.subr.bf16.mxu0 %v1117_v39  ;;  %v1126_v45 = vld [vmem:[#allocation5 + $0x34] ss:$8 sps:$4 sm:$0xff]   ;;  %v1124_v46 = vld [vmem:[#allocation5 + $0x30] ss:$8 sps:$4 sm:$0xff]   ;;  %v1129_v47 = vld [vmem:[#allocation5 + $0x24] ss:$8 sps:$4 sm:$0xff]  }
  0x34   :  { %363 = vmatpush1.bf16.msra.mxu1 %v1075_v12  ;;  %v1127_v48 = vld [vmem:[#allocation5 + $0x20] ss:$8 sps:$4 sm:$0xff]   ;;  %v1132_v49 = vld [vmem:[#allocation5 + $0x14] ss:$8 sps:$4 sm:$0xff]   ;;  %v1130_v50 = vld [vmem:[#allocation5 + $0x10] ss:$8 sps:$4 sm:$0xff]  }
  0x35   :  { %364 = vmatprep.subr.bf16.mxu1 %v1076_v13  ;;  %v1135_v51 = vld [vmem:[#allocation5 + $0x4] ss:$8 sps:$4 sm:$0xff]   ;;  %v1133_v52 = vld [vmem:[#allocation5] ss:$8 sps:$4 sm:$0xff]   ;;  %v1138_v53 = vld [vmem:[#allocation5 + $0xf4] ss:$8 sps:$4 sm:$0xff]  }
  0x36   :  { %608 = vmatpush1.bf16.msra.mxu0 %v1115_v40  ;;  %v1136_v54 = vld [vmem:[#allocation5 + $0xf0] ss:$8 sps:$4 sm:$0xff]   ;;  %v1141_v55 = vld [vmem:[#allocation5 + $0xe4] ss:$8 sps:$4 sm:$0xff]   ;;  %v1139_v56 = vld [vmem:[#allocation5 + $0xe0] ss:$8 sps:$4 sm:$0xff]  }
  0x37   :  { %609 = vmatprep.subr.bf16.mxu0 %v1120_v41  ;;  %v1144_v57 = vld [vmem:[#allocation5 + $0xd4] ss:$8 sps:$4 sm:$0xff]   ;;  %v1142_v58 = vld [vmem:[#allocation5 + $0xd0] ss:$8 sps:$4 sm:$0xff]   ;;  %v1147_v59 = vld [vmem:[#allocation5 + $0xc4] ss:$8 sps:$4 sm:$0xff]  }
  0x38   :  { %365 = vmatpush1.bf16.msra.mxu1 %v1078_v14  ;;  %v1145_v60 = vld [vmem:[#allocation5 + $0xc0] ss:$8 sps:$4 sm:$0xff]   ;;  %v1150_v61 = vld [vmem:[#allocation5 + $0xb4] ss:$8 sps:$4 sm:$0xff]   ;;  %v1148_v62 = vld [vmem:[#allocation5 + $0xb0] ss:$8 sps:$4 sm:$0xff]  }
  0x39   :  { %366 = vmatprep.subr.bf16.mxu1 %v1079_v15  ;;  %v1153_v63 = vld [vmem:[#allocation5 + $0xa4] ss:$8 sps:$4 sm:$0xff]   ;;  %v1151_v0 = vld [vmem:[#allocation5 + $0xa0] ss:$8 sps:$4 sm:$0xff]   ;;  %v84_v2 = vshrl.u32 %v83_v1, 7 }
  0x3a   :  { %610 = vmatpush1.bf16.msra.mxu0 %v1118_v42  ;;  %v81_v4 = vld [vmem:[%s1396_s3] sm:$0x3]  ;;  %v1181_v37 = vld [vmem:[#allocation7] ss:$8 sps:$4 sm:$0xff]   ;;  %v1186_v38 = vld [vmem:[#allocation7 + $0xf4] ss:$8 sps:$4 sm:$0xff]  }
  0x3b   :  { %611 = vmatprep.subr.bf16.mxu0 %v1123_v43  ;;  %v1362_v3 = vsub.s32 0, %v84_v2  ;;  %v1367_v5 = vsub.s32 1, %v84_v2  ;;  %v1184_v39 = vld [vmem:[#allocation7 + $0xf0] ss:$8 sps:$4 sm:$0xff]   ;;  %v1189_v40 = vld [vmem:[#allocation7 + $0xe4] ss:$8 sps:$4 sm:$0xff]  }
  0x3c   :  { %367 = vmatpush1.bf16.msra.mxu1 %v1081_v16  ;;  %v1187_v41 = vld [vmem:[#allocation7 + $0xe0] ss:$8 sps:$4 sm:$0xff]   ;;  %v1192_v42 = vld [vmem:[#allocation7 + $0xd4] ss:$8 sps:$4 sm:$0xff]   ;;  %v1190_v43 = vld [vmem:[#allocation7 + $0xd0] ss:$8 sps:$4 sm:$0xff]  }
  0x3d   :  { %368 = vmatprep.subr.bf16.mxu1 %v1082_v17  ;;  %v86_v6 = vrot.slane %v81_v4, %v1362_v3  ;;  %v90_v7 = vrot.slane %v81_v4, %v1367_v5  ;;  %v1207_v2 = vld [vmem:[#allocation7 + $0x84] ss:$8 sps:$4 sm:$0xff]   ;;  %v1205_v4 = vld [vmem:[#allocation7 + $0x80] ss:$8 sps:$4 sm:$0xff]  }
  0x3e   :  { %612 = vmatpush1.bf16.msra.mxu0 %v1121_v44  ;;  %v1195_v44 = vld [vmem:[#allocation7 + $0xc4] ss:$8 sps:$4 sm:$0xff]  }
  0x3f   :  { %613 = vmatprep.subr.bf16.mxu0 %v1126_v45  ;;  %v1193_v45 = vld [vmem:[#allocation7 + $0xc0] ss:$8 sps:$4 sm:$0xff]  }
  0x40   :  { %369 = vmatpush1.bf16.msra.mxu1 %v1084_v18  ;;  %v1156_v18 = vld [vmem:[#allocation5 + $0x94] ss:$8 sps:$4 sm:$0xff]  }
  0x41   :  { %370 = vmatprep.subr.bf16.mxu1 %v1085_v19  ;;  %v1154_v19 = vld [vmem:[#allocation5 + $0x90] ss:$8 sps:$4 sm:$0xff]  }
  0x42   :  { %614 = vmatpush1.bf16.msra.mxu0 %v1124_v46  ;;  %v1198_v46 = vld [vmem:[#allocation7 + $0xb4] ss:$8 sps:$4 sm:$0xff]  }
  0x43   :  { %615 = vmatprep.subr.bf16.mxu0 %v1129_v47  ;;  %v1196_v47 = vld [vmem:[#allocation7 + $0xb0] ss:$8 sps:$4 sm:$0xff]  }
  0x44   :  { %371 = vmatpush1.bf16.msra.mxu1 %v1087_v20  ;;  %v1159_v20 = vld [vmem:[#allocation5 + $0x84] ss:$8 sps:$4 sm:$0xff]  }
  0x45   :  { %372 = vmatprep.subr.bf16.mxu1 %v1088_v21  ;;  %v1157_v21 = vld [vmem:[#allocation5 + $0x80] ss:$8 sps:$4 sm:$0xff]  }
  0x46   :  { %616 = vmatpush1.bf16.msra.mxu0 %v1127_v48  ;;  %v1201_v48 = vld [vmem:[#allocation7 + $0xa4] ss:$8 sps:$4 sm:$0xff]  }
  0x47   :  { %617 = vmatprep.subr.bf16.mxu0 %v1132_v49  ;;  %v1199_v49 = vld [vmem:[#allocation7 + $0xa0] ss:$8 sps:$4 sm:$0xff]  }
  0x48   :  { %373 = vmatpush2.bf16.msra.mxu1 %v1090_v22  ;;  %v1160_v22 = vld [vmem:[#allocation7 + $0x70] ss:$8 sps:$4 sm:$0xff]  }
  0x49   :  { %374 = vmatprep.subr.bf16.mxu1 %v1091_v23  ;;  %v1162_v23 = vld [vmem:[#allocation7 + $0x74] ss:$8 sps:$4 sm:$0xff]  }
  0x4a   :  { %618 = vmatpush1.bf16.msra.mxu0 %v1130_v50  ;;  %v184_v50 = vld [vmem:[%s1398_s5] sm:$0x3] }
  0x4b   :  { %619 = vmatprep.subr.bf16.mxu0 %v1135_v51  ;;  %v189_v51 = vrot.slane %v184_v50, %v1362_v3 }
  0x4c   :  { %375 = vmatpush2.bf16.msra.mxu1 %v1093_v24  ;;  %v1165_v24 = vld [vmem:[#allocation7 + $0x64] ss:$8 sps:$4 sm:$0xff]  }
  0x4d   :  { %376 = vmatprep.subr.bf16.mxu1 %v1094_v25  ;;  %v1163_v25 = vld [vmem:[#allocation7 + $0x60] ss:$8 sps:$4 sm:$0xff]  }
  0x4e   :  { %620 = vmatpush1.bf16.msra.mxu0 %v1133_v52  ;;  %v193_v52 = vrot.slane %v184_v50, %v1367_v5 }
  0x4f   :  { %621 = vmatprep.subr.bf16.mxu0 %v1138_v53 }
  0x50   :  { %377 = vmatpush2.bf16.msra.mxu1 %v1096_v26  ;;  %v1168_v26 = vld [vmem:[#allocation7 + $0x54] ss:$8 sps:$4 sm:$0xff]  }
  0x51   :  { %378 = vmatprep.subr.bf16.mxu1 %v1097_v27  ;;  %v1166_v27 = vld [vmem:[#allocation7 + $0x50] ss:$8 sps:$4 sm:$0xff]  }
  0x52   :  { %622 = vmatpush2.bf16.msra.mxu0 %v1136_v54 }
  0x53   :  { %623 = vmatprep.subr.bf16.mxu0 %v1141_v55 }
  0x54   :  { %379 = vmatpush2.bf16.msra.mxu1 %v1099_v28  ;;  %v1171_v28 = vld [vmem:[#allocation7 + $0x44] ss:$8 sps:$4 sm:$0xff]  }
  0x55   :  { %380 = vmatprep.subr.bf16.mxu1 %v1100_v29  ;;  %v1169_v29 = vld [vmem:[#allocation7 + $0x40] ss:$8 sps:$4 sm:$0xff]  }
  0x56   :  { %624 = vmatpush2.bf16.msra.mxu0 %v1139_v56 }
  0x57   :  { %625 = vmatprep.subr.bf16.mxu0 %v1144_v57 }
  0x58   :  { %381 = vmatpush2.bf16.msra.mxu1 %v1102_v30  ;;  %v1174_v30 = vld [vmem:[#allocation7 + $0x34] ss:$8 sps:$4 sm:$0xff]  }
  0x59   :  { %382 = vmatprep.subr.bf16.mxu1 %v1103_v31  ;;  %v1172_v31 = vld [vmem:[#allocation7 + $0x30] ss:$8 sps:$4 sm:$0xff]  }
  0x5a   :  { %626 = vmatpush2.bf16.msra.mxu0 %v1142_v58 }
  0x5b   :  { %627 = vmatprep.subr.bf16.mxu0 %v1147_v59 }
  0x5c   :  { %383 = vmatpush2.bf16.msra.mxu1 %v1105_v32  ;;  %v1177_v32 = vld [vmem:[#allocation7 + $0x24] ss:$8 sps:$4 sm:$0xff]  }
  0x5d   :  { %384 = vmatprep.subr.bf16.mxu1 %v1106_v33  ;;  %v1175_v33 = vld [vmem:[#allocation7 + $0x20] ss:$8 sps:$4 sm:$0xff]  }
  0x5e   :  { %628 = vmatpush2.bf16.msra.mxu0 %v1145_v60 }
  0x5f   :  { %629 = vmatprep.subr.bf16.mxu0 %v1150_v61 }
  0x60   :  { %385 = vmatpush2.bf16.msra.mxu1 %v1108_v34  ;;  %v1180_v34 = vld [vmem:[#allocation7 + $0x14] ss:$8 sps:$4 sm:$0xff]  }
  0x61   :  { %386 = vmatprep.subr.bf16.mxu1 %v1109_v35  ;;  %v1178_v35 = vld [vmem:[#allocation7 + $0x10] ss:$8 sps:$4 sm:$0xff]  }
  0x62   :  { %630 = vmatpush2.bf16.msra.mxu0 %v1148_v62 }
  0x63   :  { %631 = vmatprep.subr.bf16.mxu0 %v1153_v63  ;;  %v1204_v63 = vld [vmem:[#allocation7 + $0x94] ss:$8 sps:$4 sm:$0xff]  }
  0x64   :  { %387 = vmatpush2.bf16.msra.mxu1 %v1111_v36  ;;  %v1183_v36 = vld [vmem:[#allocation7 + $0x4] ss:$8 sps:$4 sm:$0xff]  }
  0x65   :  { %854 = vmatprep.subr.bf16.mxu1 %v1162_v23 }
  0x66   :  { %632 = vmatpush2.bf16.msra.mxu0 %v1151_v0  ;;  %v1202_v0 = vld [vmem:[#allocation7 + $0x90] ss:$8 sps:$4 sm:$0xff]  }
  0x67   :  { %633 = vmatprep.subr.bf16.mxu0 %v1156_v18 }
  0x6a   :  { %634 = vmatpush2.bf16.msra.mxu0 %v1154_v19  ;;  %v1286_v19 = vmov 0.0  }
  0x6b   :  { %635 = vmatprep.subr.bf16.mxu0 %v1159_v20  ;;  %897 = vst [vmem:[#allocation2] sm:$0xff] %v1286_v19  ;;  %v898_v20 = vld [vmem:[%s1394_s1] sm:$0xff] }
  0x6c   :  { %900 = vst.msk [vmem:[#allocation2] sm:$0xff] %vm899_vm1, %v898_v20 }
  0x6e   :  { %636 = vmatpush2.bf16.msra.mxu0 %v1157_v21  ;;  %v682_v21 = vld [vmem:[%s1402_s9] sm:$0x3] }
  0xe9   :  { %v141_v8 = vpop.f32.mrf.mxu0 }
  0xea   :  { %v142_v9 = vadd.f32 %v141_v8, %v86_v6  ;;  %v433_v6 = vld [vmem:[%s1400_s7] sm:$0x3] }
  0xeb   :  { %v143_v10 = vpop.f32.mrf.mxu0  ;;  %v442_v8 = vrot.slane %v433_v6, %v1367_v5 }
  0xec   :  { %v144_v11 = vadd.f32 %v143_v10, %v90_v7  ;;  %v148_v12 = vmax.f32 %v142_v9, 0.0  ;;  %v438_v7 = vrot.slane %v433_v6, %v1362_v3 }
  0xed   :  { %v145_v13 = vpop.f32.mrf.mxu0 }
  0xee   :  { %v149_v14 = vmax.f32 %v144_v11, 0.0  ;;  %v150_v17 = vpack.c.bf16 %v148_v12, %v148_v12 }
  0xef   :  { %v146_v15 = vpop.f32.mrf.mxu0 }
  0xf0   :  { %v151_v16 = vpack.c.bf16 %v149_v14, %v149_v14 }
  0xf2   :  { %388 = vmatprep.mubr.bf16.mxu1 %v151_v16 }
  0xf3   :  { %389 = vmatmul.mubr.bf16.vlgmr.msra.gmra.mxu1 %v150_v17 }
  0xf4   :  { %855 = vmatpush1.bf16.msra.mxu1 %v1160_v22  ;;  %v691_v22 = vrot.slane %v682_v21, %v1367_v5 }
  0xf5   :  { %856 = vmatprep.subr.bf16.mxu1 %v1165_v24 }
  0xf8   :  { %857 = vmatpush1.bf16.msra.mxu1 %v1163_v25 }
  0xf9   :  { %858 = vmatprep.subr.bf16.mxu1 %v1168_v26 }
  0xfc   :  { %859 = vmatpush1.bf16.msra.mxu1 %v1166_v27 }
  0xfd   :  { %860 = vmatprep.subr.bf16.mxu1 %v1171_v28 }
 0x100   :  { %861 = vmatpush1.bf16.msra.mxu1 %v1169_v29 }
 0x101   :  { %862 = vmatprep.subr.bf16.mxu1 %v1174_v30 }
 0x104   :  { %863 = vmatpush1.bf16.msra.mxu1 %v1172_v31  ;;  %v687_v31 = vrot.slane %v682_v21, %v1362_v3 }
 0x105   :  { %864 = vmatprep.subr.bf16.mxu1 %v1177_v32 }
 0x108   :  { %865 = vmatpush1.bf16.msra.mxu1 %v1175_v33  ;;  %v901_v33 = vld [vmem:[#allocation2] sm:$0xff] }
 0x109   :  { %866 = vmatprep.subr.bf16.mxu1 %v1180_v34  ;;  %v906_v3 = vmul.f32 -0.5, %v901_v33 }
 0x10c   :  { %867 = vmatpush1.bf16.msra.mxu1 %v1178_v35 }
 0x10d   :  { %868 = vmatprep.subr.bf16.mxu1 %v1183_v36 }
 0x110   :  { %869 = vmatpush1.bf16.msra.mxu1 %v1181_v37 }
 0x111   :  { %870 = vmatprep.subr.bf16.mxu1 %v1186_v38 }
 0x114   :  { %871 = vmatpush2.bf16.msra.mxu1 %v1184_v39 }
 0x115   :  { %872 = vmatprep.subr.bf16.mxu1 %v1189_v40 }
 0x118   :  { %873 = vmatpush2.bf16.msra.mxu1 %v1187_v41 }
 0x119   :  { %874 = vmatprep.subr.bf16.mxu1 %v1192_v42  ;;  %v1287_v42 = vmov -1.0  }
 0x11c   :  { %875 = vmatpush2.bf16.msra.mxu1 %v1190_v43 }
 0x11d   :  { %876 = vmatprep.subr.bf16.mxu1 %v1195_v44 }
 0x120   :  { %877 = vmatpush2.bf16.msra.mxu1 %v1193_v45 }
 0x121   :  { %878 = vmatprep.subr.bf16.mxu1 %v1198_v46 }
 0x124   :  { %879 = vmatpush2.bf16.msra.mxu1 %v1196_v47 }
 0x125   :  { %880 = vmatprep.subr.bf16.mxu1 %v1201_v48 }
 0x128   :  { %881 = vmatpush2.bf16.msra.mxu1 %v1199_v49 }
 0x129   :  { %882 = vmatprep.subr.bf16.mxu1 %v1204_v63 }
 0x12c   :  { %883 = vmatpush2.bf16.msra.mxu1 %v1202_v0 }
 0x12d   :  { %884 = vmatprep.subr.bf16.mxu1 %v1207_v2 }
 0x130   :  { %885 = vmatpush2.bf16.msra.mxu1 %v1205_v4 }
 0x1b3   :  { %v390_v53 = vpop.f32.mrf.mxu1 }
 0x1b4   :  { %v391_v54 = vadd.f32 %v390_v53, %v189_v51  ;;  %v907_v51 = vmul.f32 %v906_v3, %v901_v33 }
 0x1b5   :  { %v392_v55 = vpop.f32.mrf.mxu1 }
 0x1b6   :  { %v393_v56 = vadd.f32 %v392_v55, %v193_v52  ;;  %v397_v57 = vmax.f32 %v391_v54, 0.0 }
 0x1b7   :  { %v394_v58 = vpop.f32.mrf.mxu1 }
 0x1b8   :  { %v398_v59 = vmax.f32 %v393_v56, 0.0  ;;  %v399_v62 = vpack.c.bf16 %v397_v57, %v397_v57 }
 0x1b9   :  { %v395_v60 = vpop.f32.mrf.mxu1 }
 0x1ba   :  { %v400_v61 = vpack.c.bf16 %v398_v59, %v398_v59  ;;  %v937_v60 = vand.u32 127, %v83_v1 }
 0x1bc   :  { %637 = vmatprep.mubr.bf16.mxu0 %v400_v61  ;;  %vm938_vm4 = vcmp.lt.s32.totalorder %v937_v60, 6  ;;  %vm943_vm5 = vcmp.eq.s32.totalorder %v937_v60, 6 }
 0x1bd   :  { %638 = vmatmul.mubr.bf16.vlgmr.msra.gmra.mxu0 %v399_v62 }
 0x27d   :  { %v639_v9 = vpop.f32.mrf.mxu0 }
 0x27e   :  { %v640_v10 = vadd.f32 %v639_v9, %v438_v7 }
 0x27f   :  { %v641_v11 = vpop.f32.mrf.mxu0 }
 0x280   :  { %v642_v12 = vadd.f32 %v641_v11, %v442_v8  ;;  %v646_v13 = vmax.f32 %v640_v10, 0.0 }
 0x281   :  { %v643_v14 = vpop.f32.mrf.mxu0 }
 0x282   :  { %v647_v15 = vmax.f32 %v642_v12, 0.0  ;;  %v648_v18 = vpack.c.bf16 %v646_v13, %v646_v13 }
 0x283   :  { %v644_v16 = vpop.f32.mrf.mxu0 }
 0x284   :  { %v649_v17 = vpack.c.bf16 %v647_v15, %v647_v15 }
 0x286   :  { %886 = vmatprep.mubr.bf16.mxu1 %v649_v17 }
 0x287   :  { %887 = vmatmul.mubr.bf16.vlgmr.msra.gmra.mxu1 %v648_v18 }
 0x347   :  { %v888_v23 = vpop.f32.mrf.mxu1 }
 0x348   :  { %v889_v34 = vadd.f32 %v888_v23, %v687_v31 }
 0x349   :  { %v890_v24 = vpop.f32.mrf.mxu1 }
 0x34a   :  { %v891_v25 = vadd.f32 %v890_v24, %v691_v22 }
 0x34b   :  { %v892_v26 = vpop.f32.mrf.mxu1 }
 0x34c   :  { %v895_v27 = vmax.f32 %v891_v25, -20.0 }
 0x34d   :  { %v893_v28 = vpop.f32.mrf.mxu1 }
 0x34e   :  { %v896_v29 = vmin.f32 %v895_v27, 2.0 }
 0x350   :  { %v902_v30 = vmul.f32 1.442695, %v896_v29  ;;  %v908_v57 = vsub.f32 %v907_v51, %v896_v29 }
 0x352   :  { %1208 = vpow2.f32 %v902_v30  ;;  %v1052_v62 = vadd.f32 -0.9189385, %v908_v57 }
 0x35f   :  { %v1209_v32 = vpop.eup %1208 }
 0x360   :  { %v904_v35 = vmul.f32 %v1209_v32, %v901_v33 }
 0x362   :  { %v905_v36 = vadd.f32 %v904_v35, %v889_v34 }
 0x364   :  { %v910_v37 = vand.u32 2147483647, %v905_v36  ;;  %vm914_vm2 = vcmp.ge.f32.partialorder %v905_v36, 0.0  ;;  %v921_v47 = vmul.f32 -2.0, %v905_v36  ;;  %v933_v59 = vsub.f32 0.6931472, %v905_v36 }
 0x365   :  { %v915_v43 = vsel %vm914_vm2, 1.0, %v1287_v42 }
 0x366   :  { %v911_v38 = vmul.f32 -2.0, %v910_v37  ;;  %v922_v55 = vmax.f32 %v921_v47, 0.0 }
 0x368   :  { %v912_v39 = vmul.f32 1.442695, %v911_v38 }
 0x36a   :  { %1210 = vpow2.f32 %v912_v39 }
 0x377   :  { %v1211_v5 = vpop.eup %1210 }
 0x378   :  { %v918_v40 = vadd.f32 1.0, %v1211_v5  ;;  %v916_v41 = vsub.f32 1.0, %v1211_v5  ;;  %v926_v45 = vmul.f32 -0.5, %v1211_v5  ;;  %v929_v48 = vand.u32 2147483647, %v1211_v5 }
 0x37a   :  { %1212 = vrcp.f32 %v918_v40  ;;  %v917_v44 = vmul.f32 %v916_v41, %v915_v43  ;;  %v927_v46 = vadd.f32 1.0, %v926_v45  ;;  %vm930_vm3 = vcmp.lt.f32.partialorder %v929_v48, 0.0004427343 }
 0x37b   :  { %1214 = vlog2.f32 %v918_v40 }
 0x37c   :  { %v928_v54 = vmul.f32 %v1211_v5, %v927_v46 }
 0x387   :  { %v1213_v49 = vpop.eup %1212 }
 0x388   :  { %v1215_v50 = vpop.eup %1214  ;;  %v920_v52 = vmul.f32 %v1213_v49, %v917_v44 }
 0x389   :  { %v925_v53 = vmul.f32 0.6931472, %v1215_v50 }
 0x38b   :  { %v931_v56 = vsel %vm930_vm3, %v928_v54, %v925_v53 }
 0x38c   :  { %v932_v58 = vadd.f32 %v931_v56, %v922_v55 }
 0x38e   :  { %v934_v61 = vsub.f32 %v933_v59, %v932_v58 }
 0x390   :  { %v935_v63 = vmul.f32 2.0, %v934_v61 }
 0x392   :  { %v939_v0 = vsub.f32 %v1052_v62, %v935_v63 }
 0x394   :  { %v940_v2 = vsel %vm938_vm4, %v939_v0, 0.0 }
 0x395   :  { %941 = vadd.xlane.f32.xlu0 %v940_v2 }
 0x41e   :  { %v942_v4 = vpop.xlane.xlu0 %941 }
 0x41f   :  { %v944_v6 = vsel %vm943_vm5, %v942_v4, 0.0 }
 0x420   :  { %v945_v7 = vsel %vm938_vm4, %v920_v52, %v944_v6 }
 0x421   :  { %946 = vst [vmem:[%s1403_s10] sm:$0xff] %v945_v7 }
 0x422   :  { %951 = vsyncpa [#allocation4], 1 }
 0x423   :  { %952 = vsyncpa [#allocation6], 1 }

</bundles_post_ra>
